<compile_context>
chip_gen: v7x
topology: tpu7x:2x2x1
jax: 0.10.0
libtpu: 0.0.40
codegen_flags: <defaults>
</compile_context>

<pallas_src>
import math

import numpy as np
import jax
import jax.numpy as jnp
from jax.experimental import pallas as pl
from jax.experimental.pallas import tpu as pltpu


def _recourse_add_kernel(x_ref, a_ref, out_ref):
    # x_ref:   (TB, TF) VMEM tile of inputs
    # a_ref:   (1, TF)  VMEM tile of the action row (sublane broadcast)
    # out_ref: (TB, TF) = x + action
    out_ref[...] = (x_ref[...] + a_ref[...]).astype(out_ref.dtype)


def _round_up(v: int, m: int) -> int:
    return ((v + m - 1) // m) * m


def _vmem_capacity_bytes() -> int:
    try:
        info = pltpu.get_tpu_info()
        v = getattr(info, "vmem_capacity_bytes", None)
        if v:
            return int(v)
    except Exception:
        pass
    return 64 * 1024 * 1024  # conservative default (v7x per-TensorCore)


def recourse_forward(
    x: jax.Array,
    action: jax.Array,
    *,
    force_pallas: bool = False,
    cast_action_to_x_dtype: bool = False,
):
    """Pallas equivalent of Recourse.forward.

    x:      shape (*leading, *size)
    action: shape size
    returns (x + action, cost); cost is the action parameter (immutable array,
    equivalent to deepcopy(action)).
    """
    size = action.shape
    feat = int(np.prod(size)) if len(size) else 1
    lead = x.shape[: x.ndim - len(size)]
    batch = int(np.prod(lead)) if len(lead) else 1

    cost = jnp.asarray(action)  # deepcopy(action) equivalent

    a_in = action
    if cast_action_to_x_dtype and action.dtype != x.dtype:
        # Opt-in: keep the output in x.dtype (halves write bandwidth for bf16 x).
        # Deviates from strict PyTorch type promotion, hence off by default.
        a_in = action.astype(x.dtype)

    out_dtype = jnp.result_type(x.dtype, a_in.dtype)
    x_item = jnp.dtype(x.dtype).itemsize
    a_item = jnp.dtype(a_in.dtype).itemsize
    out_item = jnp.dtype(out_dtype).itemsize

    # Small problems: a plain broadcast-add fuses into neighbours for free; the
    # pallas_call fixed launch/pipeline overhead is not worth it below ~4 MiB.
    if not force_pallas and batch * feat * out_item < (4 << 20):
        return x + a_in, cost

    # ---- Layout: fold batch rows into the lane axis when feat is not a ----
    # ---- multiple of 128 (lane-dense stores, zero extra HBM traffic).   ----
    fold = 1
    if feat % 128 != 0 and batch > 1:
        k0 = 128 // math.gcd(feat, 128)
        if k0 > 1 and batch % k0 == 0 and k0 * feat <= 65536:
            fold = k0
    rows = batch // fold
    cols = feat * fold

    x2 = x.reshape(rows, cols)          # free reshape (row-major contiguous)
    a2 = a_in.reshape(1, feat)
    if fold > 1:
        a2 = jnp.tile(a2, (1, fold))    # action is tiny; replication is free

    # ---- Generation-aware VMEM budgeting ----
    vmem_phys = _vmem_capacity_bytes()
    budget = max(8 << 20, min(24 << 20, vmem_phys // 4))        # pipeline buffers
    vmem_limit = int(min(vmem_phys // 2, 2 * budget + (4 << 20)))

    sub_item = min(x_item, out_item)
    sublane = max(8, 32 // max(sub_item, 1))     # 8 f32 / 16 bf16 / 32 int8
    row_cost = x_item + out_item                  # bytes moved per element

    # Feature tiling: keep tf == cols (single feature block; full-dim rule, no
    # 128 constraint) whenever ~512-row blocks fit the budget; otherwise split
    # the feature axis into 128-lane-aligned chunks so wide rows can never blow
    # past VMEM (fixes the tb-floor OOM concern).
    tb_target = 512
    cols_vmem = _round_up(cols, 128)              # lane padding inside VMEM
    if 2 * (tb_target * cols_vmem * row_cost + cols_vmem * a_item) <= budget:
        tf = cols
        tf_vmem = cols_vmem
    else:
        tf = (budget // (2 * tb_target * row_cost)) // 128 * 128
        tf = max(128, min(tf, _round_up(cols, 128)))
        tf_vmem = tf

    # Batch tile: biggest sublane multiple under the budget, capped at 2048
    # rows (>=512 already sits at the HBM roofline) and at ceil(rows/2) so the
    # "parallel" batch axis has >=2 blocks to feed both v7x TensorCores.
    tb = (budget // 2 - tf_vmem * a_item) // (tf_vmem * row_cost)
    tb = max(sublane, (tb // sublane) * sublane)
    tb = min(tb, 2048)
    if rows >= 2 * sublane:
        tb = min(tb, _round_up(pl.cdiv(rows, 2), sublane))
    if tb >= rows:
        tb = rows                                  # single block == full dim

    grid = (pl.cdiv(rows, tb), pl.cdiv(cols, tf))  # ragged edges handled by Pallas

    out2 = pl.pallas_call(
        _recourse_add_kernel,
        out_shape=jax.ShapeDtypeStruct((rows, cols), out_dtype),
        grid=grid,
        in_specs=[
            pl.BlockSpec((tb, tf), lambda i, j: (i, j)),   # x tile
            pl.BlockSpec((1, tf), lambda i, j: (0, j)),    # action row (resident over i)
        ],
        out_specs=pl.BlockSpec((tb, tf), lambda i, j: (i, j)),
        compiler_params=pltpu.CompilerParams(
            dimension_semantics=("parallel", "parallel"),  # both axes independent
            vmem_limit_bytes=vmem_limit,
        ),
    )(x2, a2)

    out = out2.reshape(lead + size)
    return out, cost


if __name__ == "__main__":
    key = jax.random.PRNGKey(0)
    kx, ka, kx2, ka2, kx3, ka3, kx4, ka4, kx5, ka5 = jax.random.split(key, 10)

    # Case 1: module-sized small input (batch=2, size=(4, 32) -> feat=128).
    size = (4, 32)
    batch = 2
    x = jax.random.normal(kx, (batch,) + size, dtype=jnp.float32)

    # Freshly initialized parameter (zeros), as in __init__.
    action_zero = jnp.zeros(size, dtype=jnp.float32)
    out0, cost0 = recourse_forward(x, action_zero, force_pallas=True)
    jax.block_until_ready((out0, cost0))
    np.testing.assert_allclose(np.asarray(out0), np.asarray(x), rtol=0, atol=0)
    np.testing.assert_allclose(np.asarray(cost0), np.zeros(size, np.float32))

    # Non-zero action (after some gradient steps).
    action = jax.random.normal(ka, size, dtype=jnp.float32)
    out, cost = recourse_forward(x, action, force_pallas=True)
    jax.block_until_ready((out, cost))
    np.testing.assert_allclose(
        np.asarray(out), np.asarray(x) + np.asarray(action)[None, ...],
        rtol=1e-6, atol=1e-6)
    np.testing.assert_allclose(np.asarray(cost), np.asarray(action), rtol=0, atol=0)

    # Case 2: non-128-aligned features + batch not a tile multiple
    # (no fold possible -> full-feature block + ragged final batch block).
    size2 = (5, 20)     # feat = 100
    batch2 = 37
    x2 = jax.random.normal(kx2, (batch2,) + size2, dtype=jnp.float32)
    action2 = jax.random.normal(ka2, size2, dtype=jnp.float32)
    out2, cost2 = recourse_forward(x2, action2, force_pallas=True)
    jax.block_until_ready((out2, cost2))
    np.testing.assert_allclose(
        np.asarray(out2), np.asarray(x2) + np.asarray(action2)[None, ...],
        rtol=1e-6, atol=1e-6)
    np.testing.assert_allclose(np.asarray(cost2), np.asarray(action2), rtol=0, atol=0)

    # Case 3: tiny feature dim with batch folding into the lane axis
    # (feat=4, k=32, batch=64 -> folded (2, 128), action tiled 32x).
    size3 = (4,)
    batch3 = 64
    x3 = jax.random.normal(kx3, (batch3,) + size3, dtype=jnp.float32)
    action3 = jax.random.normal(ka3, size3, dtype=jnp.float32)
    out3, cost3 = recourse_forward(x3, action3, force_pallas=True)
    jax.block_until_ready((out3, cost3))
    np.testing.assert_allclose(
        np.asarray(out3), np.asarray(x3) + np.asarray(action3)[None, ...],
        rtol=1e-6, atol=1e-6)
    np.testing.assert_allclose(np.asarray(cost3), np.asarray(action3), rtol=0, atol=0)

    # Case 4: wide feature dim -> second (feature) grid axis with ragged last
    # feature block; also exercises the >=2 batch blocks cap.
    size4 = (8192,)
    batch4 = 16
    x4 = jax.random.normal(kx4, (batch4,) + size4, dtype=jnp.float32)
    action4 = jax.random.normal(ka4, size4, dtype=jnp.float32)
    out4, cost4 = recourse_forward(x4, action4, force_pallas=True)
    jax.block_until_ready((out4, cost4))
    np.testing.assert_allclose(
        np.asarray(out4), np.asarray(x4) + np.asarray(action4)[None, ...],
        rtol=1e-6, atol=1e-6)
    np.testing.assert_allclose(np.asarray(cost4), np.asarray(action4), rtol=0, atol=0)

    # Case 5: mixed dtypes (bf16 activations + f32 parameter) -> promoted f32 out.
    size5 = (256,)
    batch5 = 8
    x5 = jax.random.normal(kx5, (batch5,) + size5, dtype=jnp.bfloat16)
    action5 = jax.random.normal(ka5, size5, dtype=jnp.float32)
    out5, cost5 = recourse_forward(x5, action5, force_pallas=True)
    jax.block_until_ready((out5, cost5))
    assert out5.dtype == jnp.float32
    ref5 = np.asarray(x5.astype(jnp.float32)) + np.asarray(action5)[None, ...]
    np.testing.assert_allclose(np.asarray(out5), ref5, rtol=1e-6, atol=1e-6)
    np.testing.assert_allclose(np.asarray(cost5), np.asarray(action5), rtol=0, atol=0)

    print("KERNEL_OK")
</pallas_src>

<mosaic_0001>
module attributes {stable_mosaic.version = 11 : i64} {
  func.func @_recourse_add_kernel(%arg0: i32, %arg1: i32, %arg2: memref<2x128xf32, #tpu.memory_space<vmem>>, %arg3: memref<1x128xf32, #tpu.memory_space<vmem>>, %arg4: memref<2x128xf32, #tpu.memory_space<vmem>>) attributes {dimension_semantics = [#tpu.dimension_semantics<parallel>, #tpu.dimension_semantics<parallel>], iteration_bounds = array<i64: 1, 1>, scalar_prefetch = 0 : i64, scratch_operands = 0 : i64, tpu.core_type = #tpu.core_type<tc>, window_params = [{transform_indices = @transform_0, window_bounds = array<i64: 2, 128>}, {transform_indices = @transform_1, window_bounds = array<i64: 1, 128>}, {transform_indices = @transform_2, window_bounds = array<i64: 2, 128>}]} {
    %c0 = arith.constant 0 : index
    %c0_0 = arith.constant 0 : index
    %0 = vector.load %arg2[%c0, %c0_0] : memref<2x128xf32, #tpu.memory_space<vmem>>, vector<2x128xf32>
    %c0_1 = arith.constant 0 : index
    %c0_2 = arith.constant 0 : index
    %1 = vector.load %arg3[%c0_1, %c0_2] : memref<1x128xf32, #tpu.memory_space<vmem>>, vector<1x128xf32>
    %2 = vector.broadcast %1 : vector<1x128xf32> to vector<2x128xf32>
    %3 = arith.addf %0, %2 : vector<2x128xf32>
    %c0_3 = arith.constant 0 : index
    %c0_4 = arith.constant 0 : index
    %4 = vector.load %arg4[%c0_3, %c0_4] : memref<2x128xf32, #tpu.memory_space<vmem>>, vector<2x128xf32>
    tpu.vector_store %arg4[%c0_3, %c0_4], %3 {strides = array<i32>} : memref<2x128xf32, #tpu.memory_space<vmem>>, vector<2x128xf32>,
    return
  }
  func.func @transform_0(%arg0: i32, %arg1: i32) -> (i32, i32) {
    %c0_i32 = arith.constant 0 : i32
    return %arg0, %arg1 : i32, i32
  }
  func.func @transform_1(%arg0: i32, %arg1: i32) -> (i32, i32) {
    %c0_i32 = arith.constant 0 : i32
    %c0_i32_0 = arith.constant 0 : i32
    return %c0_i32, %arg1 : i32, i32
  }
  func.func @transform_2(%arg0: i32, %arg1: i32) -> (i32, i32) {
    %c0_i32 = arith.constant 0 : i32
    return %arg0, %arg1 : i32, i32
  }
}

</mosaic_0001>

<bundles_post_ra>
// kernel: tpu_custom_call.1
= control target key start
LH: loop header
LB: loop body
LE: loop exit
PB: predicated region body
PF: predicated region fallthrough
CT: control target
= control target key end

     0   :  { %7 = vsyncpa [#allocation3], 0  ;;  %s144_s0 = inlined_call_operand.hbm [shape: f32[2,128], index: 0, kind: input, shape index: {}]   ;;  %s145_s1 = inlined_call_operand.vmem [shape: f32[1,128], index: 1, kind: input, shape index: {}]   ;;  %s146_s2 = inlined_call_operand.hbm [shape: f32[2,128], index: 2, kind: output, shape index: {}]  }
   0x1   :  { %8 = vsyncpa [#allocation4], 0  ;;  %s100_s9 = smov [#allocation2]   ;;  %s52_s13 = scalar_lea.hbm %s144_s0, 32 }
   0x2   :  { %s15_s10 = sshll.u32 %s100_s9, 4  ;;  %p53_p0 = scmp.ne.s32.totalorder %s144_s0, %s52_s13  ;;  %s16_s10 = int_to_ptr.vmem [resolvable:$true] %s15_s10 }
   0x3   :  { %p56_p1 = scmp.lt.u32.totalorder %s52_s13, %s144_s0 }
   0x5   :  { %p58_p2 = pnand %p56_p1, %p53_p0 }
   0x7   :  { %61 = shalt.err (!%p58_p2)
}
   0x8   :  { %s62_s18 = scalar_lea.vmem %s16_s10, 32  ;;  %p67_p4 = scmp.lt.s32.totalorder %s16_s10, %s16_s10 }
   0x9   :  { %p63_p3 = scmp.ne.s32.totalorder %s16_s10, %s62_s18  ;;  %p68_p5 = scmp.lt.s32.totalorder %s62_s18, %s62_s18 }
   0xb   :  { %p69_p6 = por %p68_p5, %p67_p4 }
   0xd   :  { %p70_p7 = pnand %p69_p6, %p63_p3 }
   0xf   :  { %73 = shalt.err (!%p70_p7)
}
  0x10   :  { %18 = dma.hbm_to_vmem [thread:$0]  %s144_s0, 32, %s16_s10, [#allocation3]  }
  0x11   :  { %96 = dma.done.wait [#allocation3], 32  }
  0x12   :  { %97 = vsyncadd [#allocation3], 4294967264  ;;  %s101_s21 = smov [#allocation5]   ;;  %v24_v0 = vld [vmem:[#allocation2] sm:$0x3] }
  0x13   :  { %s40_s22 = sshll.u32 %s101_s21, 4  ;;  %v49_v1 = vld [vmem:[%s145_s1] ss:$0 sm:$0xff]  ;;  %s41_s22 = int_to_ptr.vmem [resolvable:$true] %s40_s22 }
  0x14   :  { %v32_v2 = vadd.f32 %v49_v1, %v24_v0  ;;  %s74_s25 = scalar_lea.vmem %s41_s22, 32  ;;  %p79_p9 = scmp.lt.s32.totalorder %s41_s22, %s41_s22 }
  0x15   :  { %p75_p8 = scmp.ne.s32.totalorder %s41_s22, %s74_s25  ;;  %p80_p10 = scmp.lt.s32.totalorder %s74_s25, %s74_s25 }
  0x16   :  { %33 = vst [vmem:[#allocation5] sm:$0x3] %v32_v2 }
  0x17   :  { %p81_p11 = por %p80_p10, %p79_p9 }
  0x19   :  { %p82_p12 = pnand %p81_p11, %p75_p8 }
  0x1b   :  { %85 = shalt.err (!%p82_p12)
}
  0x1c   :  { %s86_s27 = scalar_lea.hbm %s146_s2, 32 }
  0x1d   :  { %p87_p13 = scmp.ne.s32.totalorder %s146_s2, %s86_s27  ;;  %p90_p0 = scmp.lt.u32.totalorder %s86_s27, %s146_s2 }
  0x1f   :  { %p92_p1 = pnand %p90_p0, %p87_p13 }
  0x21   :  { %95 = shalt.err (!%p92_p1)
}
  0x22   :  { %43 = dma.vmem_to_hbm [thread:$0]  %s41_s22, 32, %s146_s2, [#allocation4]  }
  0x23   :  { %98 = dma.done.wait [#allocation4], 32  }
  0x24   :  { %99 = vsyncadd [#allocation4], 4294967264 }
  0x25   :  { %47 = vsyncpa [#allocation3], 1 }
  0x26   :  { %48 = vsyncpa [#allocation4], 1 }

</bundles_post_ra>
